<compile_context>
chip_gen: v5e
topology: v5e:2x2
jax: 0.10.0
libtpu: 0.0.40
codegen_flags: <defaults>
</compile_context>

<pallas_src>
import functools
import math

import jax
import jax.numpy as jnp
from jax.experimental import pallas as pl
from jax.experimental.pallas import tpu as pltpu

LANES = 128
SUBLANES = 8
MAX_BLOCK_ROWS = 2048  # (2048, 128) f32 = 1 MiB per input tile


def _cdiv(a, b):
    return -(-a // b)


def _round_up(a, b):
    return _cdiv(a, b) * b


def _mtl_kernel(nb_bce, w_ref, op_ref, oc_ref, lp_ref, ls_ref, out_ref):
    """One grid step: steps [0, nb_bce) do BCE blocks, the rest do MSE blocks."""
    g = pl.program_id(0)

    @pl.when(g == 0)
    def _init():
        out_ref[...] = jnp.zeros_like(out_ref)

    @pl.when(g < nb_bce)
    def _bce():
        p = op_ref[...]
        y = oc_ref[...]
        # torch.nn.BCELoss clamps log terms at -100; with zero padding
        # (p=0, y=0) both terms are exactly 0, so no tail mask is needed.
        log_p = jnp.maximum(jnp.log(p), -100.0)
        log_1mp = jnp.maximum(jnp.log1p(-p), -100.0)
        ll = y * log_p + (1.0 - y) * log_1mp
        out_ref[...] -= w_ref[0] * jnp.sum(ll)

    @pl.when(g >= nb_bce)
    def _mse():
        d = lp_ref[...] - ls_ref[...]  # zero padding -> d = 0 -> contributes 0
        out_ref[...] += w_ref[1] * jnp.sum(d * d)


def _prep(x, block_rows):
    """Flatten to f32, zero-pad to one block boundary, reshape lane-dense."""
    flat = jnp.asarray(x, jnp.float32).reshape(-1)
    n = flat.shape[0]
    block_elems = block_rows * LANES
    nblocks = max(1, _cdiv(n, block_elems))
    padded = nblocks * block_elems
    if padded != n:
        flat = jnp.pad(flat, (0, padded - n))
    return flat.reshape(nblocks * block_rows, LANES), nblocks


def mtl_loss(alpha, outcome_pred, outcome, los_pred, los):
    """Pallas implementation of MTL.forward: alpha0*BCE + alpha1*MSE (mean)."""
    n_bce = max(1, math.prod(outcome_pred.shape))
    n_mse = max(1, math.prod(los_pred.shape))

    # Adaptive block: tiny inputs -> one (8,128) tile; large inputs -> 1 MiB tiles.
    rows_needed = max(SUBLANES, _cdiv(max(n_bce, n_mse), LANES))
    block_rows = min(MAX_BLOCK_ROWS, _round_up(rows_needed, SUBLANES))

    op2d, nb_bce = _prep(outcome_pred, block_rows)
    oc2d, _ = _prep(outcome, block_rows)
    lp2d, nb_mse = _prep(los_pred, block_rows)
    ls2d, _ = _prep(los, block_rows)

    alpha = jnp.asarray(alpha, jnp.float32)
    # Fold alpha and the mean normalizers into one SMEM weight vector
    # (reciprocals precomputed on the host: no in-kernel divide).
    w = jnp.stack([alpha[0] * (1.0 / n_bce),
                   alpha[1] * (1.0 / n_mse)]).astype(jnp.float32)

    grid = (nb_bce + nb_mse,)

    # Inactive tensors hold their block index constant -> no re-DMA.
    bce_map = lambda g: (jnp.minimum(g, nb_bce - 1), 0)
    mse_map = lambda g: (jnp.maximum(g - nb_bce, 0), 0)

    block_bytes = block_rows * LANES * 4
    # 4 inputs x 2 pipeline buffers + slack; capped for v7x's smaller VMEM.
    vmem_limit = int(min(48 * 2**20, max(4 * 2**20, 8 * block_bytes + 2 * 2**20)))

    cost = pl.CostEstimate(
        flops=7 * n_bce + 3 * n_mse,
        transcendentals=2 * n_bce,
        bytes_accessed=4 * 2 * (n_bce + n_mse) + 16,
    )

    out = pl.pallas_call(
        functools.partial(_mtl_kernel, nb_bce),
        out_shape=jax.ShapeDtypeStruct((1, 1), jnp.float32),
        grid=grid,
        in_specs=[
            pl.BlockSpec(memory_space=pltpu.MemorySpace.SMEM),   # weights [2]
            pl.BlockSpec((block_rows, LANES), bce_map),          # outcome_pred
            pl.BlockSpec((block_rows, LANES), bce_map),          # outcome
            pl.BlockSpec((block_rows, LANES), mse_map),          # los_pred
            pl.BlockSpec((block_rows, LANES), mse_map),          # los
        ],
        out_specs=pl.BlockSpec((1, 1), lambda g: (0, 0)),
        compiler_params=pltpu.CompilerParams(
            dimension_semantics=("arbitrary",),
            vmem_limit_bytes=vmem_limit,
        ),
        cost_estimate=cost,
    )(w, op2d, oc2d, lp2d, ls2d)
    return out[0, 0]


if __name__ == "__main__":
    key = jax.random.PRNGKey(0)
    k1, k2, k3, k4 = jax.random.split(key, 4)

    task_num = 2
    batch = 8

    # nn.Parameter(torch.ones(task_num)) -> deterministic ones init
    alpha = jnp.ones((task_num,), jnp.float32)

    # outcome_pred must be probabilities in (0, 1) for BCELoss
    outcome_pred = jax.nn.sigmoid(jax.random.normal(k1, (batch,), jnp.float32))
    outcome = (jax.random.uniform(k2, (batch,)) > 0.5).astype(jnp.float32)
    los_pred = jax.random.normal(k3, (batch,), jnp.float32) * 2.0 + 5.0
    los = jax.random.normal(k4, (batch,), jnp.float32) * 2.0 + 5.0

    loss = mtl_loss(alpha, outcome_pred, outcome, los_pred, los)
    loss = jax.block_until_ready(loss)

    # pure-JAX reference for sanity check
    ref_bce = jnp.mean(-(outcome * jnp.log(outcome_pred)
                         + (1.0 - outcome) * jnp.log(1.0 - outcome_pred)))
    ref_mse = jnp.mean((los_pred - los) ** 2)
    ref = ref_bce * alpha[0] + ref_mse * alpha[1]
    assert jnp.allclose(loss, ref, rtol=1e-5, atol=1e-5), (loss, ref)

    print("KERNEL_OK")
</pallas_src>

<mosaic_0001>
module attributes {stable_mosaic.version = 11 : i64} {
  func.func @_mtl_kernel(%arg0: i32, %arg1: memref<2xf32, #tpu.memory_space<smem>>, %arg2: memref<8x128xf32, #tpu.memory_space<vmem>>, %arg3: memref<8x128xf32, #tpu.memory_space<vmem>>, %arg4: memref<8x128xf32, #tpu.memory_space<vmem>>, %arg5: memref<8x128xf32, #tpu.memory_space<vmem>>, %arg6: memref<1x1xf32, #tpu.memory_space<vmem>>) attributes {dimension_semantics = [#tpu.dimension_semantics<arbitrary>], iteration_bounds = array<i64: 2>, scalar_prefetch = 0 : i64, scratch_operands = 0 : i64, tpu.core_type = #tpu.core_type<tc>, window_params = [{transform_indices = @transform_0, window_bounds = array<i64: 2>}, {transform_indices = @transform_1, window_bounds = array<i64: 8, 128>}, {transform_indices = @transform_2, window_bounds = array<i64: 8, 128>}, {transform_indices = @transform_3, window_bounds = array<i64: 8, 128>}, {transform_indices = @transform_4, window_bounds = array<i64: 8, 128>}, {pipeline_mode = #tpu.pipeline_mode<synchronous>, transform_indices = @transform_5, window_bounds = array<i64: 1, 1>}]} {
    %c0_i32 = arith.constant 0 : i32
    %0 = arith.cmpi eq, %arg0, %c0_i32 : i32
    %1 = arith.extui %0 : i1 to i32
    %c0_i32_0 = arith.constant 0 : i32
    %2 = arith.cmpi ne, %1, %c0_i32_0 : i32
    scf.if %2 {
      %cst = arith.constant 0.000000e+00 : f32
      %9 = vector.broadcast %cst : f32 to vector<1x1xf32>
      %c0 = arith.constant 0 : index
      %c0_4 = arith.constant 0 : index
      %10 = vector.load %arg6[%c0, %c0_4] : memref<1x1xf32, #tpu.memory_space<vmem>>, vector<1x1xf32>
      tpu.vector_store %arg6[%c0, %c0_4], %9 {strides = array<i32>} : memref<1x1xf32, #tpu.memory_space<vmem>>, vector<1x1xf32>,
    } else {
    }
    %c1_i32 = arith.constant 1 : i32
    %3 = arith.cmpi slt, %arg0, %c1_i32 : i32
    %4 = arith.extui %3 : i1 to i32
    %c0_i32_1 = arith.constant 0 : i32
    %5 = arith.cmpi ne, %4, %c0_i32_1 : i32
    scf.if %5 {
      %c0 = arith.constant 0 : index
      %c0_4 = arith.constant 0 : index
      %9 = vector.load %arg2[%c0, %c0_4] : memref<8x128xf32, #tpu.memory_space<vmem>>, vector<8x128xf32>
      %c0_5 = arith.constant 0 : index
      %c0_6 = arith.constant 0 : index
      %10 = vector.load %arg3[%c0_5, %c0_6] : memref<8x128xf32, #tpu.memory_space<vmem>>, vector<8x128xf32>
      %11 = math.log %9 : vector<8x128xf32>
      %cst = arith.constant -1.000000e+02 : f32
      %12 = vector.broadcast %cst : f32 to vector<8x128xf32>
      %13 = arith.maximumf %11, %12 : vector<8x128xf32>
      %cst_7 = arith.constant 0.000000e+00 : f32
      %14 = vector.broadcast %cst_7 : f32 to vector<8x128xf32>
      %15 = arith.subf %14, %9 : vector<8x128xf32>
      %16 = math.log1p %15 : vector<8x128xf32>
      %cst_8 = arith.constant -1.000000e+02 : f32
      %17 = vector.broadcast %cst_8 : f32 to vector<8x128xf32>
      %18 = arith.maximumf %16, %17 : vector<8x128xf32>
      %19 = arith.mulf %10, %13 : vector<8x128xf32>
      %cst_9 = arith.constant 1.000000e+00 : f32
      %20 = vector.broadcast %cst_9 : f32 to vector<8x128xf32>
      %21 = arith.subf %20, %10 : vector<8x128xf32>
      %22 = arith.mulf %21, %18 : vector<8x128xf32>
      %23 = arith.addf %19, %22 : vector<8x128xf32>
      %c0_10 = arith.constant 0 : index
      %c0_11 = arith.constant 0 : index
      %24 = vector.load %arg6[%c0_10, %c0_11] : memref<1x1xf32, #tpu.memory_space<vmem>>, vector<1x1xf32>
      %c0_12 = arith.constant 0 : index
      %25 = memref.load %arg1[%c0_12] : memref<2xf32, #tpu.memory_space<smem>>
      %26 = vector.shape_cast %23 : vector<8x128xf32> to vector<1x8x128xf32>
      %cst_13 = arith.constant dense<0.000000e+00> : vector<1xf32>
      %27 = vector.multi_reduction <add>, %26, %cst_13 [1, 2] : vector<1x8x128xf32> to vector<1xf32>
      %28 = vector.shape_cast %27 : vector<1xf32> to vector<1x1x1xf32>
      %29 = vector.extract %28[0, 0, 0] : f32 from vector<1x1x1xf32>
      %30 = arith.mulf %25, %29 : f32
      %31 = vector.broadcast %30 : f32 to vector<1x1xf32>
      %32 = arith.subf %24, %31 : vector<1x1xf32>
      %c0_14 = arith.constant 0 : index
      %c0_15 = arith.constant 0 : index
      %33 = vector.load %arg6[%c0_14, %c0_15] : memref<1x1xf32, #tpu.memory_space<vmem>>, vector<1x1xf32>
      tpu.vector_store %arg6[%c0_14, %c0_15], %32 {strides = array<i32>} : memref<1x1xf32, #tpu.memory_space<vmem>>, vector<1x1xf32>,
    } else {
    }
    %c1_i32_2 = arith.constant 1 : i32
    %6 = arith.cmpi sge, %arg0, %c1_i32_2 : i32
    %7 = arith.extui %6 : i1 to i32
    %c0_i32_3 = arith.constant 0 : i32
    %8 = arith.cmpi ne, %7, %c0_i32_3 : i32
    scf.if %8 {
      %c0 = arith.constant 0 : index
      %c0_4 = arith.constant 0 : index
      %9 = vector.load %arg4[%c0, %c0_4] : memref<8x128xf32, #tpu.memory_space<vmem>>, vector<8x128xf32>
      %c0_5 = arith.constant 0 : index
      %c0_6 = arith.constant 0 : index
      %10 = vector.load %arg5[%c0_5, %c0_6] : memref<8x128xf32, #tpu.memory_space<vmem>>, vector<8x128xf32>
      %11 = arith.subf %9, %10 : vector<8x128xf32>
      %c0_7 = arith.constant 0 : index
      %c0_8 = arith.constant 0 : index
      %12 = vector.load %arg6[%c0_7, %c0_8] : memref<1x1xf32, #tpu.memory_space<vmem>>, vector<1x1xf32>
      %c1 = arith.constant 1 : index
      %13 = memref.load %arg1[%c1] : memref<2xf32, #tpu.memory_space<smem>>
      %14 = arith.mulf %11, %11 : vector<8x128xf32>
      %15 = vector.shape_cast %14 : vector<8x128xf32> to vector<1x8x128xf32>
      %cst = arith.constant dense<0.000000e+00> : vector<1xf32>
      %16 = vector.multi_reduction <add>, %15, %cst [1, 2] : vector<1x8x128xf32> to vector<1xf32>
      %17 = vector.shape_cast %16 : vector<1xf32> to vector<1x1x1xf32>
      %18 = vector.extract %17[0, 0, 0] : f32 from vector<1x1x1xf32>
      %19 = arith.mulf %13, %18 : f32
      %20 = vector.broadcast %19 : f32 to vector<1x1xf32>
      %21 = arith.addf %12, %20 : vector<1x1xf32>
      %c0_9 = arith.constant 0 : index
      %c0_10 = arith.constant 0 : index
      %22 = vector.load %arg6[%c0_9, %c0_10] : memref<1x1xf32, #tpu.memory_space<vmem>>, vector<1x1xf32>
      tpu.vector_store %arg6[%c0_9, %c0_10], %21 {strides = array<i32>} : memref<1x1xf32, #tpu.memory_space<vmem>>, vector<1x1xf32>,
    } else {
    }
    return
  }
  func.func @transform_0(%arg0: i32) -> i32 {
    %c0_i32 = arith.constant 0 : i32
    %c0_i32_0 = arith.constant 0 : i32
    return %c0_i32 : i32
  }
  func.func @transform_1(%arg0: i32) -> (i32, i32) {
    %c0_i32 = arith.constant 0 : i32
    %0 = arith.minsi %arg0, %c0_i32 : i32
    %c0_i32_0 = arith.constant 0 : i32
    %c0_i32_1 = arith.constant 0 : i32
    return %0, %c0_i32_0 : i32, i32
  }
  func.func @transform_2(%arg0: i32) -> (i32, i32) {
    %c0_i32 = arith.constant 0 : i32
    %0 = arith.minsi %arg0, %c0_i32 : i32
    %c0_i32_0 = arith.constant 0 : i32
    %c0_i32_1 = arith.constant 0 : i32
    return %0, %c0_i32_0 : i32, i32
  }
  func.func @transform_3(%arg0: i32) -> (i32, i32) {
    %c1_i32 = arith.constant 1 : i32
    %0 = arith.subi %arg0, %c1_i32 : i32
    %c0_i32 = arith.constant 0 : i32
    %1 = arith.maxsi %0, %c0_i32 : i32
    %c0_i32_0 = arith.constant 0 : i32
    %c0_i32_1 = arith.constant 0 : i32
    return %1, %c0_i32_0 : i32, i32
  }
  func.func @transform_4(%arg0: i32) -> (i32, i32) {
    %c1_i32 = arith.constant 1 : i32
    %0 = arith.subi %arg0, %c1_i32 : i32
    %c0_i32 = arith.constant 0 : i32
    %1 = arith.maxsi %0, %c0_i32 : i32
    %c0_i32_0 = arith.constant 0 : i32
    %c0_i32_1 = arith.constant 0 : i32
    return %1, %c0_i32_0 : i32, i32
  }
  func.func @transform_5(%arg0: i32) -> (i32, i32) {
    %c0_i32 = arith.constant 0 : i32
    %c0_i32_0 = arith.constant 0 : i32
    %c0_i32_1 = arith.constant 0 : i32
    return %c0_i32, %c0_i32_0 : i32, i32
  }
}

</mosaic_0001>

<bundles_post_ra>
// kernel: tpu_custom_call.1
= control target key start
LH: loop header
LB: loop body
LE: loop exit
PB: predicated region body
PF: predicated region fallthrough
CT: control target
= control target key end

     0   :  { %s1288_s0 = inlined_call_operand.hbm [shape: f32[2], index: 0, kind: input, shape index: {}]   ;;  %s1289_s1 = inlined_call_operand.hbm [shape: f32[8,128], index: 1, kind: input, shape index: {}]   ;;  %s1290_s2 = inlined_call_operand.hbm [shape: f32[8,128], index: 2, kind: input, shape index: {}]   ;;  %s1291_s3 = inlined_call_operand.hbm [shape: f32[8,128], index: 3, kind: input, shape index: {}]   ;;  %s1292_s4 = inlined_call_operand.hbm [shape: f32[8,128], index: 4, kind: input, shape index: {}]   ;;  %s1293_s5 = inlined_call_operand.hbm [shape: f32[1,1], index: 5, kind: output, shape index: {}]  }
   0x1   :  { %1297 = sst [smem:[#allocation20_spill]] %s1288_s0 }
   0x2   :  { %1298 = sst [smem:[#allocation21_spill]] %s1290_s2 }
   0x3   :  { %10 = vsyncpa [#allocation5], 0 }
   0x4   :  { %11 = vsyncpa [#allocation3], 0 }
   0x5   :  { %13 = vsyncpa [#allocation3 + $0x1], 0 }
   0x6   :  { %14 = vsyncpa [#allocation8], 0 }
   0x7   :  { %16 = vsyncpa [#allocation8 + $0x1], 0 }
   0x8   :  { %17 = vsyncpa [#allocation11], 0 }
   0x9   :  { %19 = vsyncpa [#allocation11 + $0x1], 0 }
   0xa   :  { %20 = vsyncpa [#allocation4], 0  ;;  %s1018_s18 = smov 0   ;;  %s1020_s19 = smov 0  }
   0xb   :  { %s1022_s20 = smov 0   ;;  %s1024_s21 = smov 0  }
   0xc   :  { %s1026_s22 = smov 0   ;;  %s1028_s23 = smov 0  }
   0xd   :  { %s1030_s24 = smov 0  }
   0xe LB: > { %s1054_s25 = sadd.s32 1, %s983_s24   ;;  %p51_p0 = scmp.lt.s32.totalorder %s983_s24, 0  ;;  %s983_s24 = sphi %s1030_s24, %s1320_s24   ;;  %s979_s23 = sphi %s1028_s23, %s1319_s23   ;;  %s975_s22 = sphi %s1026_s22, %s1318_s22   ;;  %s971_s21 = sphi %s1024_s21, %s1317_s21   ;;  %s967_s20 = sphi %s1022_s20, %s1316_s20   ;;  %s963_s19 = sphi %s1020_s19, %s1315_s19   ;;  %s959_s18 = sphi %s1018_s18, %s1314_s18  }
   0xf   : > { %p53_p1 = scmp.lt.s32.totalorder %s1054_s25, 0  ;;  %s58_s26 = sadd.s32 1, %s979_s23 }
  0x10   : > { %s1060_s27 = scalar_select %p51_p0, %s983_s24, 0 }
  0x11   : > { %s54_s28 = scalar_select %p53_p1, %s1054_s25, 0 }
  0x12   : > { %p65_p2 = scmp.ne.s32.totalorder %s979_s23, %s975_s22  ;;  %p66_p3 = scmp.eq.s32.totalorder %s983_s24, 0 }
  0x13   : > { %s55_s29 = ssub.s32 %s1060_s27, %s54_s28  ;;  %p71_p4 = scmp.ne.s32.totalorder %s975_s22, %s971_s21 }
  0x14   : > { %p56_p5 = scmp.eq.s32.totalorder %s55_s29, 0  ;;  %p67_p6 = por %p66_p3, %p65_p2 }
  0x15   : > { %p127_p7 = scmp.ne.s32.totalorder %s967_s20, %s963_s19  ;;  %p675_p9 = scmp.lt.s32.totalorder %s983_s24, 2 }
  0x16   : > { %s1072_s30 = scalar_select %p56_p5, %s979_s23, %s58_s26  }
  0x17   : > { %p1074_p8 = por %p127_p7, %p66_p3  ;;  %s1294_s7 = sand.u32 1, %s979_s23  }
  0x18   : > { %1299 = sst [smem:[#allocation19_spill]] %s1072_s30  ;;  %s614_s8 = sshll.u32 %s1060_s27, 3 }
  0x19   : > { %s1083_s9 = sshll.u32 %s1294_s7, 3  ;;  %p1085_p10 = pnand %p675_p9, %p67_p6 }
  0x1a   : > { %s241_s11 = sand.u32 1, %s983_s24   ;;  %s1302_s2 = sld [smem:[#allocation21_spill]] }
  0x1b   : > { %s245_s15 = scalar_lea.vmem [#allocation7], %s1083_s9  ;;  %p1098_p11 = pnand %p675_p9, %p1074_p8 }
  0x1c   : > { %s255_s16 = sshll.u32 %s245_s15, 4  ;;  %s1102_s28 = scalar_lea.sflag [#allocation8], %s241_s11  ;;  %s256_s16 = int_to_ptr.vmem [resolvable:$true] %s255_s16 }
  0x1d   : > { %p746_p13 = pneg %p1085_p10 }
  0x20   : > { %s251_s14 = scalar_lea.hbm %s1302_s2, %s614_s8  ;;  %s749_s6 = scalar_lea.hbm %s1302_s2, 8 }
  0x21   : > { %s253_s17 = sshll.u32 %s251_s14, 4  ;;  %s254_s17 = int_to_ptr.hbm [resolvable:$true] %s253_s17 }
  0x22   : > { %s742_s29 = sshra.s32 %s254_s17, 4  ;;  %s743_s29 = int_to_ptr.hbm [resolvable:$true] %s742_s29 }
  0x23   : > { %s744_s7 = scalar_lea.hbm %s743_s29, 8  ;;  %p750_p2 = scmp.lt.s32.totalorder %s743_s29, %s1302_s2 }
  0x24   : > { %p745_p12 = scmp.ne.s32.totalorder %s743_s29, %s744_s7  ;;  %p751_p3 = scmp.lt.s32.totalorder %s749_s6, %s744_s7 }
  0x26   : > { %p747_p0 = pnand %p746_p13, %p745_p12  ;;  %p752_p5 = por %p751_p3, %p750_p2 }
  0x28   : > { %p748_p1 = pneg %p747_p0 }
  0x2a   : > { %p753_p6 = pnand %p752_p5, %p748_p1 }
  0x2c   : > { %756 = shalt.err (!%p753_p6)
}
  0x2d   : > { %667 = dma.hbm_to_vmem [thread:$0]  (!%p1085_p10), %s254_s17, 128, %s256_s16, %s1102_s28  }
  0x2e   : > { %s1119_s11 = sadd.s32 4294967295, %s983_s24   ;;  %p133_p8 = scmp.ne.s32.totalorder %s963_s19, %s959_s18 }
  0x2f   : > { %p1295_p7 = scmp.eq.s32.totalorder %s1119_s11, 0  ;;  %p610_p9 = scmp.ge.s32.totalorder %s983_s24, 1 }
  0x30   : > { %p197_p12 = scmp.lt.s32.totalorder %s983_s24, 3  ;;  %s1307_s0 = sld [smem:[#allocation20_spill]] }
  0x31   : > { %p1131_p0 = por %p1295_p7, %p71_p4  ;;  %p1137_p1 = por %p133_p8, %p1295_p7 }
  0x32   : > { %p1141_p2 = pnand %p610_p9, %p197_p12  ;;  %s230_s13 = scalar_lea.hbm %s1289_s1, %s614_s8 }
  0x33   : > { %s232_s6 = sshll.u32 %s230_s13, 4  ;;  %s224_s14 = scalar_lea.vmem [#allocation6], %s1083_s9  ;;  %s233_s6 = int_to_ptr.hbm [resolvable:$true] %s232_s6 }
  0x34   : > { %p657_p4 = pneg %p1141_p2  ;;  %s234_s15 = sshll.u32 %s224_s14, 4  ;;  %s235_s15 = int_to_ptr.vmem [resolvable:$true] %s234_s15 }
  0x35   : > { %s985_s2 = smov [#allocation2]   ;;  %p112_p6 = scmp.gt.s32.totalorder %s1119_s11, 0 }
  0x36   : > { %s209_s24 = sshll.u32 %s1307_s0, 4  ;;  %p658_p5 = pnand %p657_p4, %p1295_p7  ;;  %s210_s24 = int_to_ptr.hbm [resolvable:$true] %s209_s24 }
  0x37   : > { %s1308_s18 = sand.u32 1, %s979_s23   ;;  %s787_s0 = sshra.s32 %s233_s6, 4  ;;  %s788_s0 = int_to_ptr.hbm [resolvable:$true] %s787_s0 }
  0x38   : > { %660 = dma.hbm_to_smem (!%p658_p5), %s210_s24, 16, %s985_s2, [#allocation5]  }
  0x39   : > { %s221_s21 = scalar_lea.sflag [#allocation3], %s1308_s18  ;;  %s789_s30 = scalar_lea.hbm %s788_s0, 8 }
  0x3a   : > { %p790_p8 = scmp.ne.s32.totalorder %s788_s0, %s789_s30  ;;  %s794_s9 = scalar_lea.hbm %s1289_s1, 8 }
  0x3b   : > { %p795_p4 = scmp.lt.s32.totalorder %s788_s0, %s1289_s1  ;;  %p796_p5 = scmp.lt.s32.totalorder %s794_s9, %s789_s30 }
  0x3c   : > { %p792_p9 = pnand %p790_p8, %p746_p13 }
  0x3d   : > { %p797_p3 = por %p796_p5, %p795_p4 }
  0x3e   : > { %p793_p12 = pneg %p792_p9 }
  0x40   : > { %p798_p7 = pnand %p797_p3, %p793_p12 }
  0x42   : > { %801 = shalt.err (!%p798_p7)
}
  0x43   : > { %664 = dma.hbm_to_vmem [thread:$0]  (!%p1085_p10), %s233_s6, 128, %s235_s15, %s221_s21  }
  0x44   : > { %s1176_s2 = scalar_select %p112_p6, %s1119_s11, 0 }
  0x45   : > { %s607_s0 = sadd.s32 4294967295, %s1054_s25  ;;  %s120_s30 = sadd.s32 1, %s967_s20 }
  0x46   : > { %p115_p13 = scmp.gt.s32.totalorder %s607_s0, 0  ;;  %s1296_s24 = sand.u32 1, %s967_s20  }
  0x47   : > { %s617_s13 = sshll.u32 %s1296_s24, 3  ;;  %s619_s10 = sshll.u32 %s1176_s2, 3 }
  0x48   : > { %s1322_s0 = smov (!%p115_p13, %s607_s0), 0  ;;  %s273_s6 = scalar_lea.hbm %s1291_s3, %s619_s10 }
  0x49   : > { %s117_s15 = ssub.s32 %s1176_s2, %s1322_s0  ;;  %s275_s21 = sshll.u32 %s273_s6, 4  ;;  %s276_s21 = int_to_ptr.hbm [resolvable:$true] %s275_s21 }
  0x4a   : > { %p118_p10 = scmp.eq.s32.totalorder %s117_s15, 0  ;;  %s266_s27 = scalar_lea.vmem [#allocation9], %s617_s13 }
  0x4b   : > { %s277_s8 = sshll.u32 %s266_s27, 4  ;;  %s817_s29 = sshra.s32 %s276_s21, 4  ;;  %s278_s8 = int_to_ptr.vmem [resolvable:$true] %s277_s8  ;;  %s818_s29 = int_to_ptr.hbm [resolvable:$true] %s817_s29 }
  0x4c   : > { %s1189_s9 = scalar_select %p118_p10, %s967_s20, %s120_s30  }
  0x4d   : > { %s819_s12 = scalar_lea.hbm %s818_s29, 8  ;;  %p821_p3 = pneg %p1098_p11 }
  0x4e   : > { %p820_p7 = scmp.ne.s32.totalorder %s818_s29, %s819_s12  ;;  %s824_s0 = scalar_lea.hbm %s1291_s3, 8 }
  0x4f   : > { %p825_p9 = scmp.lt.s32.totalorder %s818_s29, %s1291_s3  ;;  %p826_p12 = scmp.lt.s32.totalorder %s824_s0, %s819_s12 }
  0x50   : > { %p822_p6 = pnand %p821_p3, %p820_p7 }
  0x51   : > { %p827_p4 = por %p826_p12, %p825_p9 }
  0x52   : > { %p823_p8 = pneg %p822_p6 }
  0x54   : > { %p828_p5 = pnand %p827_p4, %p823_p8 }
  0x56   : > { %831 = shalt.err (!%p828_p5)
}
  0x57   : > { %670 = dma.hbm_to_vmem [thread:$0]  (!%p1098_p11), %s276_s21, 128, %s278_s8, %s1102_s28  }
  0x58   : > { %s295_s27 = scalar_lea.hbm %s1292_s4, %s619_s10  ;;  %s288_s14 = scalar_lea.vmem [#allocation10], %s617_s13 }
  0x59   : > { %s299_s2 = sshll.u32 %s288_s14, 4  ;;  %s297_s24 = sshll.u32 %s295_s27, 4  ;;  %s300_s2 = int_to_ptr.vmem [resolvable:$true] %s299_s2  ;;  %s298_s24 = int_to_ptr.hbm [resolvable:$true] %s297_s24 }
  0x5a   : > { %s1309_s29 = sand.u32 1, %s967_s20   ;;  %s847_s0 = sshra.s32 %s298_s24, 4  ;;  %s848_s0 = int_to_ptr.hbm [resolvable:$true] %s847_s0 }
  0x5b   : > { %s285_s12 = scalar_lea.sflag [#allocation11], %s1309_s29  ;;  %s849_s18 = scalar_lea.hbm %s848_s0, 8 }
  0x5c   : > { %p850_p13 = scmp.ne.s32.totalorder %s848_s0, %s849_s18  ;;  %s854_s8 = scalar_lea.hbm %s1292_s4, 8 }
  0x5d   : > { %p855_p6 = scmp.lt.s32.totalorder %s848_s0, %s1292_s4  ;;  %p856_p8 = scmp.lt.s32.totalorder %s854_s8, %s849_s18 }
  0x5e   : > { %p852_p10 = pnand %p850_p13, %p821_p3 }
  0x5f   : > { %p857_p9 = por %p856_p8, %p855_p6 }
  0x60   : > { %p853_p7 = pneg %p852_p10 }
  0x62   : > { %p858_p12 = pnand %p857_p9, %p853_p7 }
  0x64   : > { %861 = shalt.err (!%p858_p12)
}
  0x65   : > { %673 = dma.hbm_to_vmem [thread:$0]  (!%p1098_p11), %s298_s24, 128, %s300_s2, %s285_s12  }
  0x66   : > { %308 = sbr.rel (%p1141_p2) target bundleno = 546 (0x222), region = 40  ;;  %p1310_p3 = scmp.eq.s32.totalorder (!%p1141_p2), %s1119_s11, 0 }
  0x6b   : > { %934 = dma.done.wait (%p1310_p3), [#allocation5], 16   ;;  %p1311_p4 = pmov %p1310_p3 }
  0x6c   : > { %s315_s6 = sand.u32 1, %s975_s22  }
  0x6d   : > { %936 = vsyncadd (%p1311_p4), [#allocation5], 4294967280  ;;  %s1228_s30 = sshll.u32 %s315_s6, 3  ;;  %s316_s15 = scalar_lea.sflag [#allocation3], %s315_s6 }
  0x6e   : > { %s319_s27 = scalar_lea.vmem [#allocation6], %s1228_s30 }
  0x6f   : > { %938 = dma.done.wait (%p1131_p0), %s316_s15, 128  }
  0x70   : > { %940 = vsyncadd (%p1131_p0), %s316_s15, 4294967168  ;;  %s325_s26 = sand.u32 1, %s1119_s11   ;;  %s329_s24 = scalar_lea.vmem [#allocation7], %s1228_s30 }
  0x71   : > { %s326_s17 = scalar_lea.sflag [#allocation8], %s325_s26 }
  0x72   : > { %942 = dma.done.wait (%p1131_p0), %s326_s17, 128  }
  0x73   : > { %944 = vsyncadd (%p1131_p0), %s326_s17, 4294967168  ;;  %s337_s14 = sand.u32 1, %s963_s19  }
  0x74   : > { %s1242_s2 = sshll.u32 %s337_s14, 3 }
  0x75   : > { %s339_s29 = scalar_lea.vmem [#allocation9], %s1242_s2 }
  0x76   : > { %946 = dma.done.wait (%p1137_p1), %s326_s17, 128  }
  0x77   : > { %948 = vsyncadd (%p1137_p1), %s326_s17, 4294967168  ;;  %s346_s12 = scalar_lea.sflag [#allocation11], %s337_s14  ;;  %s349_s0 = scalar_lea.vmem [#allocation10], %s1242_s2 }
  0x78   : > { %950 = dma.done.wait (%p1137_p1), %s346_s12, 128  }
  0x79   : > { %952 = vsyncadd (%p1137_p1), %s346_s12, 4294967168 }
  0x7a   : > { %355 = sfence }
  0x7b   : > { %p1312_p11 = scmp.ne.s32.totalorder %s1119_s11, 0 }
  0x7d   : > { %401 = sbr.rel (%p1312_p11) target bundleno = 132 (0x84), region = 64 }
  0x82   : > { %vm402_vm0 = vcmask 0   ;;  %v986_v0 = vmov 0.0  }
  0x83   : > { %403 = vst.msk [vmem:[#allocation12] sm:$0x1] %vm402_vm0, %v986_v0 }
  0x84 PF: > { %p630_p0 = scmp.ge.s32.totalorder %s1119_s11, 1 }
  0x85   : > { %s429_s7 = sld [smem:[#allocation2]] (!%p630_p0) }
  0x86   : > { %407 = sbr.rel (%p630_p0) target bundleno = 344 (0x158), region = 68 }
  0x8b   : > { %v408_v1 = vld [vmem:[%s319_s27] sm:$0xff]  ;;  %v409_v9 = vld [vmem:[%s329_s24] sm:$0xff]  ;;  %vm442_vm2 = vcmask 0  }
  0x8c   : > { %738 = vlog2.f32 %v408_v1  ;;  %v413_v2 = vsub.f32 0.0, %v408_v1  ;;  %v425_v14 = vsub.f32 1.0, %v409_v9  ;;  %v428_v27 = vld [vmem:[#allocation12] sm:$0x1] }
  0x8e   : > { %v414_v3 = vadd.f32 1.0, %v413_v2  ;;  %v417_v4 = vmul.f32 -0.5, %v413_v2  ;;  %v420_v7 = vand.u32 2147483647, %v413_v2 }
  0x90   : > { %740 = vlog2.f32 %v414_v3  ;;  %v418_v5 = vadd.f32 1.0, %v417_v4  ;;  %vm421_vm1 = vcmp.lt.f32.partialorder %v420_v7, 0.0004427343 }
  0x92   : > { %v739_v6 = vpop.eup %738  ;;  %v419_v10 = vmul.f32 %v418_v5, %v413_v2 }
  0x93   : > { %v411_v8 = vmul.f32 0.6931472, %v739_v6 }
  0x95   : > { %v412_v12 = vmax.f32 %v411_v8, -100.0 }
  0x96   : > { %v741_v11 = vpop.eup %740 }
  0x97   : > { %v416_v13 = vmul.f32 0.6931472, %v741_v11  ;;  %v424_v17 = vmul.f32 %v412_v12, %v409_v9 }
  0x99   : > { %v422_v15 = vsel %vm421_vm1, %v419_v10, %v416_v13 }
  0x9a   : > { %v423_v16 = vmax.f32 %v422_v15, -100.0 }
  0x9c   : > { %v426_v18 = vmul.f32 %v425_v14, %v423_v16 }
  0x9e   : > { %v427_v19 = vadd.f32 %v426_v18, %v424_v17 }
  0xa0   : > { %430 = vadd.xlane.f32.xlu0 %v427_v19 }
 0x113   : > { %v431_v20 = vpop.xlane.xlu0 %430 }
 0x114   : > { %v432_v21 = vrot.slane %v431_v20, 4 }
 0x116   : > { %v433_v22 = vadd.f32 %v432_v21, %v431_v20 }
 0x118   : > { %v434_v23 = vrot.slane %v433_v22, 2 }
 0x11a   : > { %v435_v24 = vadd.f32 %v434_v23, %v433_v22 }
 0x11c   : > { %v436_v25 = vrot.slane %v435_v24, 1 }
 0x11e   : > { %v437_v26 = vadd.f32 %v436_v25, %v435_v24 }
 0x120   : > { %637 = vpush %v437_v26 }
 0x151   : > { %s638_s16 = spop %637 }
 0x152   : > { %s439_s18 = smul.f32 %s638_s16, %s429_s7 }
 0x154   : > { %v440_v28 = vstv %s439_s18 }
 0x155   : > { %v441_v29 = vsub.f32 %v428_v27, %v440_v28 }
 0x157   : > { %443 = vst.msk [vmem:[#allocation12] sm:$0x1] %vm442_vm2, %v441_v29 }
 0x158 PF: > { %p631_p1 = scmp.lt.s32.totalorder %s1119_s11, 1 }
 0x159   : > { %s632_s28 = sld [smem:[#allocation2 + $0x1]] (!%p631_p1) }
 0x15a   : > { %447 = sbr.rel (%p631_p1) target bundleno = 540 (0x21c), region = 72 }
 0x15f   : > { %v448_v30 = vld [vmem:[%s339_s29] sm:$0xff]  ;;  %v449_v31 = vld [vmem:[%s349_s0] sm:$0xff]  ;;  %vm466_vm3 = vcmask 0  }
 0x160   : > { %v450_v32 = vsub.f32 %v448_v30, %v449_v31  ;;  %v451_v41 = vld [vmem:[#allocation12] sm:$0x1] }
 0x162   : > { %v453_v33 = vmul.f32 %v450_v32, %v450_v32 }
 0x164   : > { %454 = vadd.xlane.f32.xlu0 %v453_v33 }
 0x1d7   : > { %v455_v34 = vpop.xlane.xlu0 %454 }
 0x1d8   : > { %v456_v35 = vrot.slane %v455_v34, 4 }
 0x1da   : > { %v457_v36 = vadd.f32 %v456_v35, %v455_v34 }
 0x1dc   : > { %v458_v37 = vrot.slane %v457_v36, 2 }
 0x1de   : > { %v459_v38 = vadd.f32 %v458_v37, %v457_v36 }
 0x1e0   : > { %v460_v39 = vrot.slane %v459_v38, 1 }
 0x1e2   : > { %v461_v40 = vadd.f32 %v460_v39, %v459_v38 }
 0x1e4   : > { %639 = vpush %v461_v40 }
 0x215   : > { %s640_s21 = spop %639 }
 0x216   : > { %s463_s8 = smul.f32 %s640_s21, %s632_s28 }
 0x218   : > { %v464_v42 = vstv %s463_s8 }
 0x219   : > { %v465_v43 = vadd.f32 %v464_v42, %v451_v41 }
 0x21b   : > { %467 = vst.msk [vmem:[#allocation12] sm:$0x1] %vm466_vm3, %v465_v43 }
 0x21c PF: > { %p677_p2 = scmp.eq.s32.totalorder %s1119_s11, 1  ;;  %s476_s6 = sshll.u32 %s1293_s5, 4  ;;  %s477_s6 = int_to_ptr.hbm [resolvable:$true] %s476_s6 }
 0x21d   : > { %s987_s30 = smov [#allocation12]  }
 0x21e   : > { %s474_s15 = sshll.u32 %s987_s30, 4  ;;  %s475_s15 = int_to_ptr.vmem [resolvable:$true] %s474_s15 }
 0x21f   : > { %654 = dma.vmem_to_hbm [thread:$0]  (%p677_p2), %s475_s15, 16, %s477_s6, [#allocation4]  }
 0x220   : > { %954 = dma.done.wait (%p677_p2), [#allocation4], 16  }
 0x221   : > { %956 = vsyncadd (%p677_p2), [#allocation4], 4294967280 }
 0x222 PF: > { %s1313_s27 = sld [smem:[#allocation19_spill]]  ;;  %p23_p5 = scmp.ge.s32.totalorder %s1054_s25, 4  }
 0x223   : > { %s1314_s18 = smov %s963_s19  ;;  %s1315_s19 = smov %s967_s20 }
 0x224   : > { %s1316_s20 = smov %s1189_s9  ;;  %s1317_s21 = smov %s975_s22 }
 0x225   : > { %s1318_s22 = smov %s979_s23  ;;  %s1320_s24 = smov %s1054_s25 }
 0x226   :  { %25 = sbr.rel (!%p23_p5) target bundleno = 14 (0xe), region = 131 }
 0x228   : > { %s1319_s23 = smov %s1313_s27 }
 0x22b   :  { %490 = vsyncpa [#allocation3], 1 }
 0x22c   :  { %492 = vsyncpa [#allocation3 + $0x1], 1 }
 0x22d   :  { %493 = vsyncpa [#allocation8], 1 }
 0x22e   :  { %495 = vsyncpa [#allocation8 + $0x1], 1 }
 0x22f   :  { %496 = vsyncpa [#allocation11], 1 }
 0x230   :  { %498 = vsyncpa [#allocation11 + $0x1], 1 }
 0x231   :  { %499 = vsyncpa [#allocation4], 1 }
 0x232   :  { %501 = vsyncpa [#allocation4 + $0x1], 1 }
 0x233   :  { %502 = vsyncpa [#allocation5], 1 }
 0x234   :  { %504 = vsyncpa [#allocation5 + $0x1], 1 }

</bundles_post_ra>
